<compile_context>
chip_gen: v5e
topology: v5e:2x2
jax: 0.10.0
libtpu: 0.0.40
codegen_flags: <defaults>
</compile_context>

<pallas_src>
import functools

import jax
import jax.numpy as jnp
from jax.experimental import pallas as pl
from jax.experimental.pallas import tpu as pltpu

F_IN = 128          # hardcoded Linear(128, emb_dim) in the PyTorch MLP
NUM_MLP_LAYERS = 5  # num_mlp_layers=5
BN_EPS = 1e-5
LANE = 128          # TPU lane width; hidden dim is zero-padded to a multiple
SUBLANE = 8


def _round_up(x, m):
    return ((x + m - 1) // m) * m


def _choose_tile_n(n_rows, requested):
    """Pick the row-tile size.

    - tiny batches: one tile of round_up(N, 8) rows (block == full padded
      output, so the (8,128) rule is satisfied by 'equals full array dim')
    - large batches: lane-multiple tiles up to `requested`, split so the
      'parallel' grid axis has >= 2 tiles (keeps both v7x TensorCores busy).
    """
    if n_rows <= LANE:
        return _round_up(n_rows, SUBLANE)
    tile = min(_round_up(requested, LANE), _round_up(n_rows, LANE))
    if pl.cdiv(n_rows, tile) < 2:
        tile = max(LANE, _round_up(pl.cdiv(n_rows, 2), LANE))
    return tile


def _vmem_budget_bytes(tile_n, ep):
    """Explicit scoped-VMEM budget: resident weights + pipelined x/out tiles +
    live f32 activations, with 2x headroom. Never below 32 MiB (so v5e's 16 MiB
    default can't trip), capped at v7x's 64 MiB physical ceiling."""
    n_hidden = NUM_MLP_LAYERS - 1
    weights = (F_IN * ep + n_hidden * ep * ep + ep) * 2          # bf16 matmul weights
    weights += (ep + n_hidden * ep) * 4                          # f32 folded biases
    x_tiles = 2 * tile_n * F_IN * 4                              # double-buffered f32 input
    out_tiles = 2 * tile_n * 4                                   # double-buffered f32 output
    act = 3 * tile_n * ep * 4                                    # live h copies
    est = weights + x_tiles + out_tiles + act
    return int(min(64 << 20, max(32 << 20, 2 * est + (4 << 20))))


# ---------------------------------------------------------------------------
# Pallas kernel: fused MLP head (matmuls + folded-BN bias + ReLU + clamp)
# ---------------------------------------------------------------------------
def _mlp_kernel(x_ref, w0_ref, c0_ref, wh_ref, ch_ref, wf_ref, bf_ref, out_ref):
    bf16 = jnp.bfloat16

    # In-kernel f32 -> bf16 cast of the streamed activation tile (VPU work,
    # hidden under the MXU); avoids a wrapper-side HBM round trip.
    x = x_ref[...].astype(bf16)

    # Layer 0: Linear(128, E) (BN scale pre-folded into columns) + bias + ReLU.
    h = jnp.dot(x, w0_ref[...], preferred_element_type=jnp.float32)
    h = jnp.maximum(h + c0_ref[...], 0.0)

    # Hidden layers 1..num_mlp_layers-1 (weights resident in VMEM, static unroll).
    for i in range(NUM_MLP_LAYERS - 1):
        h = jnp.dot(h.astype(bf16), wh_ref[i], preferred_element_type=jnp.float32)
        h = jnp.maximum(h + ch_ref[i][None, :], 0.0)

    # Final Linear(E, 1) computed as wf_row contracted against h's feature dim
    # (transposed-rhs MXU operand, equivalent to pl.dot(wf, h, trans_b=True)),
    # so the result is already lane-dense (1, tile_n): full-width unmasked vst.
    out = jax.lax.dot_general(
        wf_ref[...], h.astype(bf16),
        dimension_numbers=(((1,), (1,)), ((), ())),
        preferred_element_type=jnp.float32) + bf_ref[0]
    out_ref[...] = jnp.clip(out, 0.0, 50.0)


def mlp_head_pallas(x, kparams, *, tile_n=512):
    """x: (N, 128) float32 -> (N,) float32 clamped predictions."""
    w0, c0, wh, ch, wf, bf = kparams
    N, F = x.shape
    assert F == F_IN
    Ep = w0.shape[1]                          # padded hidden width (multiple of 128)

    tile = _choose_tile_n(N, tile_n)
    n_tiles = pl.cdiv(N, tile)
    N_pad = n_tiles * tile                    # output width; rows >= N are discarded

    # Advisory cost for XLA scheduling around the custom call.
    flops = 2 * N_pad * (F_IN * Ep + (NUM_MLP_LAYERS - 1) * Ep * Ep + Ep)
    bytes_accessed = (N * F_IN * 4 + N_pad * 4
                      + (w0.size + wh.size + wf.size) * 2
                      + (c0.size + ch.size + bf.size) * 4)

    # Whole-array, VMEM-resident operands (constant across the grid; not
    # re-blocked per step). Scalar final bias lives in SMEM.
    vmem = pl.BlockSpec(memory_space=pltpu.MemorySpace.VMEM)
    smem = pl.BlockSpec(memory_space=pltpu.MemorySpace.SMEM)

    out = pl.pallas_call(
        _mlp_kernel,
        out_shape=jax.ShapeDtypeStruct((1, N_pad), jnp.float32),
        grid_spec=pltpu.PrefetchScalarGridSpec(
            num_scalar_prefetch=0,
            grid=(n_tiles,),
            in_specs=[
                pl.BlockSpec((tile, F_IN), lambda i: (i, 0)),   # streamed f32 x tile
                vmem, vmem,                                     # w0 (bf16), c0 (f32)
                vmem, vmem,                                     # wh (bf16), ch (f32)
                vmem,                                           # wf row (bf16)
                smem,                                           # scalar bias (f32)
            ],
            out_specs=pl.BlockSpec((1, tile), lambda i: (0, i)),  # lane-dense out
        ),
        compiler_params=pltpu.CompilerParams(
            dimension_semantics=("parallel",),
            vmem_limit_bytes=_vmem_budget_bytes(tile, Ep)),
        cost_estimate=pl.CostEstimate(
            flops=flops, transcendentals=0, bytes_accessed=bytes_accessed),
    )(x, w0, c0, wh, ch, wf, bf)

    return out.reshape(-1)[:N]   # .view(-1) + drop padded rows


# ---------------------------------------------------------------------------
# Parameter construction (deterministic, mirrors a freshly-initialized module)
# ---------------------------------------------------------------------------
def init_mlp_params(key, emb_dim):
    """Logical (unpadded, f32) parameters. BN at PyTorch defaults
    (gamma=1, beta=0, running_mean=0, running_var=1) folded into a per-channel
    affine: y = z * a + c with a = gamma/sqrt(var+eps), c = beta - mean*a + bias*a."""
    keys = jax.random.split(key, 2 * (NUM_MLP_LAYERS + 1))

    def linear(kw, kb, fan_in, fan_out):
        bound = 1.0 / jnp.sqrt(fan_in)
        w = jax.random.uniform(kw, (fan_in, fan_out), jnp.float32, -bound, bound)
        b = jax.random.uniform(kb, (fan_out,), jnp.float32, -bound, bound)
        return w, b

    gamma = jnp.ones((emb_dim,), jnp.float32)
    beta = jnp.zeros((emb_dim,), jnp.float32)
    mean = jnp.zeros((emb_dim,), jnp.float32)
    var = jnp.ones((emb_dim,), jnp.float32)
    a_bn = gamma / jnp.sqrt(var + BN_EPS)          # (E,)
    shift = beta - mean * a_bn                     # (E,)

    # layer 0
    w0, b0 = linear(keys[0], keys[1], F_IN, emb_dim)
    a0 = a_bn.reshape(1, emb_dim)
    c0 = (b0 * a_bn + shift).reshape(1, emb_dim)

    # hidden layers
    wh_list, ah_list, ch_list = [], [], []
    for i in range(NUM_MLP_LAYERS - 1):
        w, b = linear(keys[2 + 2 * i], keys[3 + 2 * i], emb_dim, emb_dim)
        wh_list.append(w)
        ah_list.append(a_bn)
        ch_list.append(b * a_bn + shift)
    wh = jnp.stack(wh_list)                        # (L-1, E, E)
    ah = jnp.stack(ah_list)                        # (L-1, E)
    ch = jnp.stack(ch_list)                        # (L-1, E)

    # final Linear(E, 1)
    wf, bf = linear(keys[-2], keys[-1], emb_dim, 1)
    bf = bf.reshape(1, 1)

    return (w0, a0, c0, wh, ah, ch, wf, bf)


def pad_params_for_kernel(params):
    """Fold the BN scale into the preceding Linear's columns (exact per-column
    rescale done before the bf16 cast), zero-pad the hidden width E up to a
    multiple of 128 (lane width), and cast matmul weights to bf16. Padded lanes
    stay exactly 0 through bias/ReLU and contribute 0 to the (zero-padded)
    final weight row, so numerics match the unpadded math."""
    w0, a0, c0, wh, ah, ch, wf, bf = params
    E = w0.shape[1]
    pe = (-E) % LANE

    w0f = w0 * a0                                  # (128,E) scaled columns
    whf = wh * ah[:, None, :]                      # (L-1,E,E) scaled output columns

    w0p = jnp.pad(w0f, ((0, 0), (0, pe))).astype(jnp.bfloat16)
    c0p = jnp.pad(c0, ((0, 0), (0, pe)))
    whp = jnp.pad(whf, ((0, 0), (0, pe), (0, pe))).astype(jnp.bfloat16)
    chp = jnp.pad(ch, ((0, 0), (0, pe)))
    wfp = jnp.pad(wf[:, 0], ((0, pe),)).reshape(1, E + pe).astype(jnp.bfloat16)
    bfp = bf.reshape(-1)                           # (1,) f32 scalar -> SMEM
    return (w0p, c0p, whp, chp, wfp, bfp)


# ---------------------------------------------------------------------------
# RGCN forward: identity RGCNConv layers, then the MLP head kernel
# ---------------------------------------------------------------------------
def rgcn_forward(X, kernel_params, num_layers=2, tile_n=512):
    # convs[:-1] are RGCNConv layers: their forward returns X unchanged.
    # TODO(synk): belief-propagation sparse side computation not translated.
    for _ in range(num_layers):
        X = X  # identity on the tensor path
    # convs[-1] is the MLP head (eval path: mlp(x).view(-1).clamp(0, 50)).
    return mlp_head_pallas(X, kernel_params, tile_n=tile_n)


# ---------------------------------------------------------------------------
# Pure-JAX references
# ---------------------------------------------------------------------------
def mlp_ref_f32(X, params):
    w0, a0, c0, wh, ah, ch, wf, bf = params
    h = jnp.maximum(X @ w0 * a0 + c0, 0.0)
    for i in range(NUM_MLP_LAYERS - 1):
        h = jnp.maximum(h @ wh[i] * ah[i][None, :] + ch[i][None, :], 0.0)
    out = h @ wf + bf[0, 0]
    return jnp.clip(out, 0.0, 50.0).reshape(-1)


def mlp_ref_bf16(X, kparams):
    """Same math as the kernel (folded bf16 weights, f32 accumulation)."""
    w0, c0, wh, ch, wf, bf = kparams
    b16 = jnp.bfloat16
    h = jnp.dot(X.astype(b16), w0, preferred_element_type=jnp.float32)
    h = jnp.maximum(h + c0, 0.0)
    for i in range(NUM_MLP_LAYERS - 1):
        h = jnp.dot(h.astype(b16), wh[i], preferred_element_type=jnp.float32)
        h = jnp.maximum(h + ch[i][None, :], 0.0)
    out = jnp.dot(h.astype(b16), wf.T, preferred_element_type=jnp.float32) + bf[0]
    return jnp.clip(out, 0.0, 50.0).reshape(-1)


if __name__ == "__main__":
    key = jax.random.PRNGKey(0)
    k_x, k_p, k_x2 = jax.random.split(key, 3)

    N = 16          # small number of nodes (batch rows)
    E = 32          # emb_dim (hidden width of the MLP head)

    X = jax.random.normal(k_x, (N, F_IN), jnp.float32)   # node features (N, 128)
    Y = jnp.zeros((N,), jnp.float32)                      # unused by the tensor path
    params = init_mlp_params(k_p, E)                      # logical f32 params
    kparams = pad_params_for_kernel(params)               # folded / padded / bf16

    fwd = jax.jit(functools.partial(rgcn_forward, num_layers=2))
    pred = jax.block_until_ready(fwd(X, kparams))

    assert pred.shape == (N,)
    # tight check against a reference using identical folded-bf16-matmul math
    assert jnp.allclose(pred, mlp_ref_bf16(X, kparams), atol=1e-2, rtol=1e-2), \
        "kernel/bf16-ref mismatch"
    # sanity check against the full-f32 reference (bf16 quantization tolerance)
    assert jnp.allclose(pred, mlp_ref_f32(X, params), atol=6e-2, rtol=6e-2), \
        "kernel/f32-ref mismatch"

    # second case: larger ragged N -> lane-multiple tiles, >=2-tile grid,
    # ragged last input tile handled by Pallas (padded rows sliced off)
    N2 = 300
    X2 = jax.random.normal(k_x2, (N2, F_IN), jnp.float32)
    head = jax.jit(functools.partial(mlp_head_pallas, tile_n=512))
    pred2 = jax.block_until_ready(head(X2, kparams))
    assert pred2.shape == (N2,)
    assert jnp.allclose(pred2, mlp_ref_bf16(X2, kparams), atol=1e-2, rtol=1e-2), \
        "kernel/bf16-ref mismatch (ragged case)"

    print("KERNEL_OK")
</pallas_src>

<mosaic_0001>
module attributes {stable_mosaic.version = 11 : i64} {
  func.func @_mlp_kernel(%arg0: i32, %arg1: memref<16x128xf32, #tpu.memory_space<vmem>>, %arg2: memref<128x128xbf16, #tpu.memory_space<vmem>>, %arg3: memref<1x128xf32, #tpu.memory_space<vmem>>, %arg4: memref<4x128x128xbf16, #tpu.memory_space<vmem>>, %arg5: memref<4x128xf32, #tpu.memory_space<vmem>>, %arg6: memref<1x128xbf16, #tpu.memory_space<vmem>>, %arg7: memref<1xf32, #tpu.memory_space<smem>>, %arg8: memref<1x16xf32, #tpu.memory_space<vmem>>) attributes {dimension_semantics = [#tpu.dimension_semantics<parallel>], iteration_bounds = array<i64: 1>, scalar_prefetch = 0 : i64, scratch_operands = 0 : i64, tpu.core_type = #tpu.core_type<tc>, window_params = [{transform_indices = @transform_0, window_bounds = array<i64: 16, 128>}, {pipeline_mode = #tpu.pipeline_mode<synchronous>, transform_indices = @transform_1, window_bounds = array<i64: 128, 128>}, {pipeline_mode = #tpu.pipeline_mode<synchronous>, transform_indices = @transform_2, window_bounds = array<i64: 1, 128>}, {pipeline_mode = #tpu.pipeline_mode<synchronous>, transform_indices = @transform_3, window_bounds = array<i64: 4, 128, 128>}, {pipeline_mode = #tpu.pipeline_mode<synchronous>, transform_indices = @transform_4, window_bounds = array<i64: 4, 128>}, {pipeline_mode = #tpu.pipeline_mode<synchronous>, transform_indices = @transform_5, window_bounds = array<i64: 1, 128>}, {transform_indices = @transform_6, window_bounds = array<i64: 1>}, {transform_indices = @transform_7, window_bounds = array<i64: 1, 16>}]} {
    %c0 = arith.constant 0 : index
    %c0_0 = arith.constant 0 : index
    %0 = vector.load %arg1[%c0, %c0_0] : memref<16x128xf32, #tpu.memory_space<vmem>>, vector<16x128xf32>
    %1 = arith.truncf %0 : vector<16x128xf32> to vector<16x128xbf16>
    %c0_1 = arith.constant 0 : index
    %c0_2 = arith.constant 0 : index
    %2 = vector.load %arg2[%c0_1, %c0_2] : memref<128x128xbf16, #tpu.memory_space<vmem>>, vector<128x128xbf16>
    %cst = arith.constant dense<0.000000e+00> : vector<16x128xf32>
    %3 = tpu.matmul %1, %2, %cst {dimension_numbers = #tpu.dot_dimension_numbers<[1], [0], [0], [1], [0, 0, 1, 1], [], []>} : vector<16x128xbf16>, vector<128x128xbf16>, vector<16x128xf32> -> vector<16x128xf32>
    %c0_3 = arith.constant 0 : index
    %c0_4 = arith.constant 0 : index
    %4 = vector.load %arg3[%c0_3, %c0_4] : memref<1x128xf32, #tpu.memory_space<vmem>>, vector<1x128xf32>
    %5 = vector.broadcast %4 : vector<1x128xf32> to vector<16x128xf32>
    %6 = arith.addf %3, %5 : vector<16x128xf32>
    %cst_5 = arith.constant 0.000000e+00 : f32
    %7 = vector.broadcast %cst_5 : f32 to vector<16x128xf32>
    %8 = arith.maximumf %6, %7 : vector<16x128xf32>
    %9 = arith.truncf %8 : vector<16x128xf32> to vector<16x128xbf16>
    %c0_6 = arith.constant 0 : index
    %c0_7 = arith.constant 0 : index
    %c0_8 = arith.constant 0 : index
    %10 = vector.load %arg4[%c0_6, %c0_7, %c0_8] : memref<4x128x128xbf16, #tpu.memory_space<vmem>>, vector<1x128x128xbf16>
    %11 = vector.shape_cast %10 : vector<1x128x128xbf16> to vector<128x128xbf16>
    %cst_9 = arith.constant dense<0.000000e+00> : vector<16x128xf32>
    %12 = tpu.matmul %9, %11, %cst_9 {dimension_numbers = #tpu.dot_dimension_numbers<[1], [0], [0], [1], [0, 0, 1, 1], [], []>} : vector<16x128xbf16>, vector<128x128xbf16>, vector<16x128xf32> -> vector<16x128xf32>
    %c0_10 = arith.constant 0 : index
    %c0_11 = arith.constant 0 : index
    %13 = vector.load %arg5[%c0_10, %c0_11] : memref<4x128xf32, #tpu.memory_space<vmem>>, vector<1x128xf32>
    %14 = vector.shape_cast %13 : vector<1x128xf32> to vector<128xf32>
    %15 = vector.shape_cast %14 : vector<128xf32> to vector<1x128xf32>
    %16 = vector.broadcast %15 : vector<1x128xf32> to vector<16x128xf32>
    %17 = arith.addf %12, %16 : vector<16x128xf32>
    %cst_12 = arith.constant 0.000000e+00 : f32
    %18 = vector.broadcast %cst_12 : f32 to vector<16x128xf32>
    %19 = arith.maximumf %17, %18 : vector<16x128xf32>
    %20 = arith.truncf %19 : vector<16x128xf32> to vector<16x128xbf16>
    %c1 = arith.constant 1 : index
    %c0_13 = arith.constant 0 : index
    %c0_14 = arith.constant 0 : index
    %21 = vector.load %arg4[%c1, %c0_13, %c0_14] : memref<4x128x128xbf16, #tpu.memory_space<vmem>>, vector<1x128x128xbf16>
    %22 = vector.shape_cast %21 : vector<1x128x128xbf16> to vector<128x128xbf16>
    %cst_15 = arith.constant dense<0.000000e+00> : vector<16x128xf32>
    %23 = tpu.matmul %20, %22, %cst_15 {dimension_numbers = #tpu.dot_dimension_numbers<[1], [0], [0], [1], [0, 0, 1, 1], [], []>} : vector<16x128xbf16>, vector<128x128xbf16>, vector<16x128xf32> -> vector<16x128xf32>
    %c1_16 = arith.constant 1 : index
    %c0_17 = arith.constant 0 : index
    %24 = vector.load %arg5[%c1_16, %c0_17] : memref<4x128xf32, #tpu.memory_space<vmem>>, vector<1x128xf32>
    %25 = vector.shape_cast %24 : vector<1x128xf32> to vector<128xf32>
    %26 = vector.shape_cast %25 : vector<128xf32> to vector<1x128xf32>
    %27 = vector.broadcast %26 : vector<1x128xf32> to vector<16x128xf32>
    %28 = arith.addf %23, %27 : vector<16x128xf32>
    %cst_18 = arith.constant 0.000000e+00 : f32
    %29 = vector.broadcast %cst_18 : f32 to vector<16x128xf32>
    %30 = arith.maximumf %28, %29 : vector<16x128xf32>
    %31 = arith.truncf %30 : vector<16x128xf32> to vector<16x128xbf16>
    %c2 = arith.constant 2 : index
    %c0_19 = arith.constant 0 : index
    %c0_20 = arith.constant 0 : index
    %32 = vector.load %arg4[%c2, %c0_19, %c0_20] : memref<4x128x128xbf16, #tpu.memory_space<vmem>>, vector<1x128x128xbf16>
    %33 = vector.shape_cast %32 : vector<1x128x128xbf16> to vector<128x128xbf16>
    %cst_21 = arith.constant dense<0.000000e+00> : vector<16x128xf32>
    %34 = tpu.matmul %31, %33, %cst_21 {dimension_numbers = #tpu.dot_dimension_numbers<[1], [0], [0], [1], [0, 0, 1, 1], [], []>} : vector<16x128xbf16>, vector<128x128xbf16>, vector<16x128xf32> -> vector<16x128xf32>
    %c2_22 = arith.constant 2 : index
    %c0_23 = arith.constant 0 : index
    %35 = vector.load %arg5[%c2_22, %c0_23] : memref<4x128xf32, #tpu.memory_space<vmem>>, vector<1x128xf32>
    %36 = vector.shape_cast %35 : vector<1x128xf32> to vector<128xf32>
    %37 = vector.shape_cast %36 : vector<128xf32> to vector<1x128xf32>
    %38 = vector.broadcast %37 : vector<1x128xf32> to vector<16x128xf32>
    %39 = arith.addf %34, %38 : vector<16x128xf32>
    %cst_24 = arith.constant 0.000000e+00 : f32
    %40 = vector.broadcast %cst_24 : f32 to vector<16x128xf32>
    %41 = arith.maximumf %39, %40 : vector<16x128xf32>
    %42 = arith.truncf %41 : vector<16x128xf32> to vector<16x128xbf16>
    %c3 = arith.constant 3 : index
    %c0_25 = arith.constant 0 : index
    %c0_26 = arith.constant 0 : index
    %43 = vector.load %arg4[%c3, %c0_25, %c0_26] : memref<4x128x128xbf16, #tpu.memory_space<vmem>>, vector<1x128x128xbf16>
    %44 = vector.shape_cast %43 : vector<1x128x128xbf16> to vector<128x128xbf16>
    %cst_27 = arith.constant dense<0.000000e+00> : vector<16x128xf32>
    %45 = tpu.matmul %42, %44, %cst_27 {dimension_numbers = #tpu.dot_dimension_numbers<[1], [0], [0], [1], [0, 0, 1, 1], [], []>} : vector<16x128xbf16>, vector<128x128xbf16>, vector<16x128xf32> -> vector<16x128xf32>
    %c3_28 = arith.constant 3 : index
    %c0_29 = arith.constant 0 : index
    %46 = vector.load %arg5[%c3_28, %c0_29] : memref<4x128xf32, #tpu.memory_space<vmem>>, vector<1x128xf32>
    %47 = vector.shape_cast %46 : vector<1x128xf32> to vector<128xf32>
    %48 = vector.shape_cast %47 : vector<128xf32> to vector<1x128xf32>
    %49 = vector.broadcast %48 : vector<1x128xf32> to vector<16x128xf32>
    %50 = arith.addf %45, %49 : vector<16x128xf32>
    %cst_30 = arith.constant 0.000000e+00 : f32
    %51 = vector.broadcast %cst_30 : f32 to vector<16x128xf32>
    %52 = arith.maximumf %50, %51 : vector<16x128xf32>
    %c0_31 = arith.constant 0 : index
    %c0_32 = arith.constant 0 : index
    %53 = vector.load %arg6[%c0_31, %c0_32] : memref<1x128xbf16, #tpu.memory_space<vmem>>, vector<1x128xbf16>
    %54 = arith.truncf %52 : vector<16x128xf32> to vector<16x128xbf16>
    %cst_33 = arith.constant dense<0.000000e+00> : vector<1x16xf32>
    %55 = tpu.matmul %53, %54, %cst_33 {dimension_numbers = #tpu.dot_dimension_numbers<[1], [1], [0], [0], [0, 0, 1, 0], [], []>} : vector<1x128xbf16>, vector<16x128xbf16>, vector<1x16xf32> -> vector<1x16xf32>
    %c0_34 = arith.constant 0 : index
    %56 = memref.load %arg7[%c0_34] : memref<1xf32, #tpu.memory_space<smem>>
    %57 = vector.broadcast %56 : f32 to vector<1x16xf32>
    %58 = arith.addf %55, %57 : vector<1x16xf32>
    %cst_35 = arith.constant 0.000000e+00 : f32
    %cst_36 = arith.constant 5.000000e+01 : f32
    %59 = vector.broadcast %cst_35 : f32 to vector<1x16xf32>
    %60 = arith.maximumf %59, %58 : vector<1x16xf32>
    %61 = vector.broadcast %cst_36 : f32 to vector<1x16xf32>
    %62 = arith.minimumf %61, %60 : vector<1x16xf32>
    %c0_37 = arith.constant 0 : index
    %c0_38 = arith.constant 0 : index
    %63 = vector.load %arg8[%c0_37, %c0_38] : memref<1x16xf32, #tpu.memory_space<vmem>>, vector<1x16xf32>
    tpu.vector_store %arg8[%c0_37, %c0_38], %62 {strides = array<i32>} : memref<1x16xf32, #tpu.memory_space<vmem>>, vector<1x16xf32>,
    return
  }
  func.func @transform_0(%arg0: i32) -> (i32, i32) {
    %c0_i32 = arith.constant 0 : i32
    %c0_i32_0 = arith.constant 0 : i32
    return %arg0, %c0_i32 : i32, i32
  }
  func.func @transform_1(%arg0: i32) -> (i32, i32) {
    %c0_i32 = arith.constant 0 : i32
    %c0_i32_0 = arith.constant 0 : i32
    %c0_i32_1 = arith.constant 0 : i32
    return %c0_i32, %c0_i32_0 : i32, i32
  }
  func.func @transform_2(%arg0: i32) -> (i32, i32) {
    %c0_i32 = arith.constant 0 : i32
    %c0_i32_0 = arith.constant 0 : i32
    %c0_i32_1 = arith.constant 0 : i32
    return %c0_i32, %c0_i32_0 : i32, i32
  }
  func.func @transform_3(%arg0: i32) -> (i32, i32, i32) {
    %c0_i32 = arith.constant 0 : i32
    %c0_i32_0 = arith.constant 0 : i32
    %c0_i32_1 = arith.constant 0 : i32
    %c0_i32_2 = arith.constant 0 : i32
    return %c0_i32, %c0_i32_0, %c0_i32_1 : i32, i32, i32
  }
  func.func @transform_4(%arg0: i32) -> (i32, i32) {
    %c0_i32 = arith.constant 0 : i32
    %c0_i32_0 = arith.constant 0 : i32
    %c0_i32_1 = arith.constant 0 : i32
    return %c0_i32, %c0_i32_0 : i32, i32
  }
  func.func @transform_5(%arg0: i32) -> (i32, i32) {
    %c0_i32 = arith.constant 0 : i32
    %c0_i32_0 = arith.constant 0 : i32
    %c0_i32_1 = arith.constant 0 : i32
    return %c0_i32, %c0_i32_0 : i32, i32
  }
  func.func @transform_6(%arg0: i32) -> i32 {
    %c0_i32 = arith.constant 0 : i32
    %c0_i32_0 = arith.constant 0 : i32
    return %c0_i32 : i32
  }
  func.func @transform_7(%arg0: i32) -> (i32, i32) {
    %c0_i32 = arith.constant 0 : i32
    %c0_i32_0 = arith.constant 0 : i32
    return %c0_i32, %arg0 : i32, i32
  }
}

</mosaic_0001>

<bundles_post_ra>
// kernel: rgcn_forward.1
= control target key start
LH: loop header
LB: loop body
LE: loop exit
PB: predicated region body
PF: predicated region fallthrough
CT: control target
= control target key end

     0   :  { %13 = vsyncpa [#allocation4], 0  ;;  %s933_s0 = inlined_call_operand.hbm [shape: f32[16,128], index: 0, kind: input, shape index: {}]   ;;  %s934_s1 = inlined_call_operand.hbm [shape: bf16[128,128], index: 1, kind: input, shape index: {}]   ;;  %s935_s2 = inlined_call_operand.vmem [shape: f32[1,128], index: 2, kind: input, shape index: {}]   ;;  %s936_s3 = inlined_call_operand.hbm [shape: bf16[4,128,128], index: 3, kind: input, shape index: {}]   ;;  %s937_s4 = inlined_call_operand.vmem [shape: f32[4,128], index: 4, kind: input, shape index: {}]   ;;  %s938_s5 = inlined_call_operand.vmem [shape: bf16[1,128], index: 5, kind: input, shape index: {}]   ;;  %s939_s6 = inlined_call_operand.<no memory space> [shape: f32[1], index: 6, kind: input, shape index: {}]   ;;  %s940_s7 = inlined_call_operand.hbm [shape: f32[1,16], index: 7, kind: output, shape index: {}]  }
   0x1   :  { %14 = vsyncpa [#allocation7], 0  ;;  %s33_s26 = sshll.u32 %s934_s1, 4  ;;  %s34_s26 = int_to_ptr.hbm [resolvable:$true] %s33_s26 }
   0x2   :  { %15 = vsyncpa [#allocation5], 0  ;;  %s852_s27 = smov [#allocation6]   ;;  %s20_s8 = sshll.u32 %s933_s0, 4  ;;  %s21_s8 = int_to_ptr.hbm [resolvable:$true] %s20_s8 }
   0x3   :  { %s35_s28 = sshll.u32 %s852_s27, 4  ;;  %s853_s9 = smov 64   ;;  %s36_s28 = int_to_ptr.vmem [resolvable:$true] %s35_s28 }
   0x4   :  { %s854_s10 = smov 4   ;;  %s855_s11 = smov [#allocation3]  }
   0x5   :  { %41 = dma.hbm_to_vmem [thread:$0]  %s34_s26, 1024, %s36_s28, [#allocation7], %s853_s9, %s853_s9, %s854_s10  }
   0x6   :  { %s22_s12 = sshll.u32 %s855_s11, 4  ;;  %s856_s13 = smov 128   ;;  %s23_s12 = int_to_ptr.vmem [resolvable:$true] %s22_s12 }
   0x7   :  { %s857_s14 = smov 8   ;;  %s48_s16 = sshll.u32 %s936_s3, 4  ;;  %s49_s16 = int_to_ptr.hbm [resolvable:$true] %s48_s16 }
   0x8   :  { %28 = dma.hbm_to_vmem [thread:$0]  %s21_s8, 256, %s23_s12, [#allocation4], %s856_s13, %s856_s13, %s857_s14  }
   0x9   :  { %s858_s17 = smov [#allocation8]  }
   0xa   :  { %s50_s18 = sshll.u32 %s858_s17, 4  ;;  %s51_s18 = int_to_ptr.vmem [resolvable:$true] %s50_s18 }
   0xb   :  { %56 = dma.hbm_to_vmem [thread:$0]  %s49_s16, 4096, %s51_s18, [#allocation7], %s853_s9, %s853_s9, %s854_s10  }
   0xc   :  { %846 = dma.done.wait [#allocation4], 256  }
   0xd   :  { %847 = vsyncadd [#allocation4], 4294967040 }
   0xe   :  { %848 = dma.done.wait [#allocation7], 5120  }
   0xf   :  { %849 = vsyncadd [#allocation7], 4294962176  ;;  %v704_v0 = vld [vmem:[#allocation6 + $0x38] sm:$0xff]  ;;  %v703_v1 = vld [vmem:[#allocation6 + $0x30] sm:$0xff]  ;;  %s859_s30 = smov [#allocation9]   ;;  %s526_s10 = sshll.u32 %s940_s7, 4  ;;  %s527_s10 = int_to_ptr.hbm [resolvable:$true] %s526_s10 }
  0x10   :  { %147 = vmatpush.bf16.msra.mxu0 %v704_v0  ;;  %v712_v2 = vld [vmem:[#allocation8 + $0x38] sm:$0xff]  ;;  %v711_v3 = vld [vmem:[#allocation8 + $0x30] sm:$0xff]  ;;  %v702_v4 = vld [vmem:[#allocation6 + $0x28] sm:$0xff]  ;;  %vm517_vm0 = vcmask 122880  }
  0x11   :  { %230 = vmatpush.bf16.msra.mxu1 %v712_v2  ;;  %v710_v5 = vld [vmem:[#allocation8 + $0x28] sm:$0xff]  ;;  %v701_v6 = vld [vmem:[#allocation6 + $0x20] sm:$0xff]  ;;  %v700_v8 = vld [vmem:[#allocation6 + $0x18] sm:$0xff] }
  0x12   :  { %v709_v7 = vld [vmem:[#allocation8 + $0x20] sm:$0xff]  ;;  %v699_v9 = vld [vmem:[#allocation6 + $0x10] sm:$0xff]  ;;  %v698_v10 = vld [vmem:[#allocation6 + $0x8] sm:$0xff] }
  0x13   :  { %v697_v11 = vld [vmem:[#allocation6] sm:$0xff]  ;;  %v76_v12 = vld [vmem:[#allocation3] sm:$0xff]  ;;  %v77_v13 = vld [vmem:[#allocation3 + $0x8] sm:$0xff] }
  0x14   :  { %148 = vmatpush.bf16.msra.mxu0 %v703_v1  ;;  %v78_v14 = vpack.c.bf16 %v77_v13, %v76_v12  ;;  %v708_v15 = vld [vmem:[#allocation8 + $0x18] sm:$0xff]  ;;  %v707_v16 = vld [vmem:[#allocation8 + $0x10] sm:$0xff]  ;;  %v706_v17 = vld [vmem:[#allocation8 + $0x8] sm:$0xff] }
  0x15   :  { %231 = vmatpush.bf16.msra.mxu1 %v711_v3  ;;  %v705_v18 = vld [vmem:[#allocation8] sm:$0xff]  ;;  %v720_v19 = vld [vmem:[#allocation8 + $0x78] sm:$0xff]  ;;  %v719_v20 = vld [vmem:[#allocation8 + $0x70] sm:$0xff] }
  0x16   :  { %314 = vmatpush.bf16.msra.mxu2 %v720_v19  ;;  %v718_v21 = vld [vmem:[#allocation8 + $0x68] sm:$0xff]  ;;  %v717_v22 = vld [vmem:[#allocation8 + $0x60] sm:$0xff]  ;;  %v745_v24 = vld [vmem:[%s935_s2] ss:$0 sm:$0xff] }
  0x17   :  { %v716_v31 = vld [vmem:[#allocation8 + $0x58] sm:$0xff]  ;;  %v715_v32 = vld [vmem:[#allocation8 + $0x50] sm:$0xff]  ;;  %v714_v33 = vld [vmem:[#allocation8 + $0x48] sm:$0xff] }
  0x18   :  { %149 = vmatpush.bf16.msra.mxu0 %v702_v4  ;;  %v713_v34 = vld [vmem:[#allocation8 + $0x40] sm:$0xff]  ;;  %v728_v35 = vld [vmem:[#allocation8 + $0xb8] sm:$0xff]  ;;  %v727_v36 = vld [vmem:[#allocation8 + $0xb0] sm:$0xff] }
  0x19   :  { %232 = vmatpush.bf16.msra.mxu1 %v710_v5  ;;  %398 = vmatpush.bf16.msra.mxu3 %v728_v35  ;;  %v726_v37 = vld [vmem:[#allocation8 + $0xa8] sm:$0xff]  ;;  %v725_v38 = vld [vmem:[#allocation8 + $0xa0] sm:$0xff]  ;;  %v746_v40 = vld [vmem:[%s937_s4] ss:$0 sm:$0xff] }
  0x1a   :  { %315 = vmatpush.bf16.msra.mxu2 %v719_v20  ;;  %v724_v47 = vld [vmem:[#allocation8 + $0x98] sm:$0xff]  ;;  %v723_v48 = vld [vmem:[#allocation8 + $0x90] sm:$0xff]  ;;  %v722_v49 = vld [vmem:[#allocation8 + $0x88] sm:$0xff]  ;;  %v501_v20 = vstv %s939_s6 }
  0x1b   :  { %v721_v50 = vld [vmem:[#allocation8 + $0x80] sm:$0xff]  ;;  %v736_v51 = vld [vmem:[#allocation8 + $0xf8] sm:$0xff]  ;;  %v735_v52 = vld [vmem:[#allocation8 + $0xf0] sm:$0xff] }
  0x1c   :  { %150 = vmatpush.bf16.msra.mxu0 %v701_v6  ;;  %v734_v53 = vld [vmem:[#allocation8 + $0xe8] sm:$0xff]  ;;  %v733_v54 = vld [vmem:[#allocation8 + $0xe0] sm:$0xff]  ;;  %v747_v56 = vld [vmem:[%s937_s4 + $0x1] ss:$0 sm:$0xff] }
  0x1d   :  { %233 = vmatpush.bf16.msra.mxu1 %v709_v7  ;;  %399 = vmatpush.bf16.msra.mxu3 %v727_v36  ;;  %v732_v63 = vld [vmem:[#allocation8 + $0xd8] sm:$0xff]  ;;  %v731_v0 = vld [vmem:[#allocation8 + $0xd0] sm:$0xff]  ;;  %v730_v1 = vld [vmem:[#allocation8 + $0xc8] sm:$0xff] }
  0x1e   :  { %316 = vmatpush.bf16.msra.mxu2 %v718_v21  ;;  %v729_v2 = vld [vmem:[#allocation8 + $0xc0] sm:$0xff]  ;;  %v748_v4 = vld [vmem:[%s937_s4 + $0x2] ss:$0 sm:$0xff]  ;;  %v749_v12 = vld [vmem:[%s937_s4 + $0x3] ss:$0 sm:$0xff]  ;;  %s524_s4 = sshll.u32 %s859_s30, 4  ;;  %s525_s4 = int_to_ptr.vmem [resolvable:$true] %s524_s4 }
  0x1f   :  { %v498_v19 = vld [vmem:[%s938_s5] sm:$0x1] }
  0x20   :  { %151 = vmatpush.bf16.msra.mxu0 %v700_v8 }
  0x21   :  { %234 = vmatpush.bf16.msra.mxu1 %v708_v15  ;;  %400 = vmatpush.bf16.msra.mxu3 %v726_v37 }
  0x22   :  { %317 = vmatpush.bf16.msra.mxu2 %v717_v22 }
  0x24   :  { %152 = vmatpush.bf16.msra.mxu0 %v699_v9 }
  0x25   :  { %235 = vmatpush.bf16.msra.mxu1 %v707_v16  ;;  %401 = vmatpush.bf16.msra.mxu3 %v725_v38 }
  0x26   :  { %318 = vmatpush.bf16.msra.mxu2 %v716_v31 }
  0x28   :  { %153 = vmatpush.bf16.msra.mxu0 %v698_v10 }
  0x29   :  { %236 = vmatpush.bf16.msra.mxu1 %v706_v17  ;;  %402 = vmatpush.bf16.msra.mxu3 %v724_v47 }
  0x2a   :  { %319 = vmatpush.bf16.msra.mxu2 %v715_v32 }
  0x2c   :  { %154 = vmatpush.bf16.msra.mxu0 %v697_v11 }
  0x2d   :  { %237 = vmatpush.bf16.msra.mxu1 %v705_v18  ;;  %403 = vmatpush.bf16.msra.mxu3 %v723_v48 }
  0x2e   :  { %320 = vmatpush.bf16.msra.mxu2 %v714_v33 }
  0x2f   :  { %155 = vmatmul.bf16.vlgmr.msra.gmra.mxu0 %v78_v14 }
  0x30   :  { %482 = vmatpush.bf16.msrb.mxu0 %v736_v51 }
  0x31   :  { %404 = vmatpush.bf16.msra.mxu3 %v722_v49 }
  0x32   :  { %321 = vmatpush.bf16.msra.mxu2 %v713_v34 }
  0x34   :  { %483 = vmatpush.bf16.msrb.mxu0 %v735_v52 }
  0x35   :  { %405 = vmatpush.bf16.msra.mxu3 %v721_v50 }
  0x38   :  { %484 = vmatpush.bf16.msrb.mxu0 %v734_v53 }
  0x3c   :  { %485 = vmatpush.bf16.msrb.mxu0 %v733_v54 }
  0x40   :  { %486 = vmatpush.bf16.msrb.mxu0 %v732_v63 }
  0x44   :  { %487 = vmatpush.bf16.msrb.mxu0 %v731_v0 }
  0x48   :  { %488 = vmatpush.bf16.msrb.mxu0 %v730_v1 }
  0x4c   :  { %489 = vmatpush.bf16.msrb.mxu0 %v729_v2 }
  0xac   :  { %v156_v23 = vpop.f32.mrf.mxu0 }
  0xad   :  { %v157_v25 = vadd.f32 %v745_v24, %v156_v23 }
  0xaf   :  { %v161_v28 = vmax.f32 %v157_v25, 0.0 }
  0xb4   :  { %v158_v26 = vpop.f32.mrf.mxu0 }
  0xb5   :  { %v159_v27 = vadd.f32 %v745_v24, %v158_v26 }
  0xb7   :  { %v162_v29 = vmax.f32 %v159_v27, 0.0 }
  0xb9   :  { %v163_v30 = vpack.c.bf16 %v162_v29, %v161_v28 }
  0xbb   :  { %238 = vmatmul.bf16.vlgmr.msra.gmra.mxu1 %v163_v30 }
 0x138   :  { %v239_v39 = vpop.f32.mrf.mxu1 }
 0x139   :  { %v240_v41 = vadd.f32 %v746_v40, %v239_v39 }
 0x13b   :  { %v244_v44 = vmax.f32 %v240_v41, 0.0 }
 0x140   :  { %v241_v42 = vpop.f32.mrf.mxu1 }
 0x141   :  { %v242_v43 = vadd.f32 %v746_v40, %v241_v42 }
 0x143   :  { %v245_v45 = vmax.f32 %v242_v43, 0.0 }
 0x145   :  { %v246_v46 = vpack.c.bf16 %v245_v45, %v244_v44 }
 0x147   :  { %322 = vmatmul.bf16.vlgmr.msra.gmra.mxu2 %v246_v46 }
 0x1ca   :  { %v323_v55 = vpop.f32.mrf.mxu2 }
 0x1cb   :  { %v324_v57 = vadd.f32 %v747_v56, %v323_v55 }
 0x1cd   :  { %v328_v60 = vmax.f32 %v324_v57, 0.0 }
 0x1d2   :  { %v325_v58 = vpop.f32.mrf.mxu2 }
 0x1d3   :  { %v326_v59 = vadd.f32 %v747_v56, %v325_v58 }
 0x1d5   :  { %v329_v61 = vmax.f32 %v326_v59, 0.0 }
 0x1d7   :  { %v330_v62 = vpack.c.bf16 %v329_v61, %v328_v60 }
 0x1d9   :  { %406 = vmatmul.bf16.vlgmr.msra.gmra.mxu3 %v330_v62 }
 0x25c   :  { %v407_v3 = vpop.f32.mrf.mxu3 }
 0x25d   :  { %v408_v5 = vadd.f32 %v748_v4, %v407_v3 }
 0x25f   :  { %v412_v8 = vmax.f32 %v408_v5, 0.0 }
 0x264   :  { %v409_v6 = vpop.f32.mrf.mxu3 }
 0x265   :  { %v410_v7 = vadd.f32 %v748_v4, %v409_v6 }
 0x267   :  { %v413_v9 = vmax.f32 %v410_v7, 0.0 }
 0x269   :  { %v414_v10 = vpack.c.bf16 %v413_v9, %v412_v8 }
 0x26b   :  { %490 = vmatmul.bf16.vlgmr.msrb.gmra.mxu0 %v414_v10 }
 0x2e8   :  { %v491_v11 = vpop.f32.mrf.mxu0 }
 0x2e9   :  { %v492_v13 = vadd.f32 %v749_v12, %v491_v11 }
 0x2eb   :  { %v496_v16 = vmax.f32 %v492_v13, 0.0 }
 0x2f0   :  { %v493_v14 = vpop.f32.mrf.mxu0 }
 0x2f1   :  { %v494_v15 = vadd.f32 %v749_v12, %v493_v14 }
 0x2f3   :  { %v497_v17 = vmax.f32 %v494_v15, 0.0 }
 0x2f5   :  { %v499_v18 = vpack.c.bf16 %v497_v17, %v496_v16 }
 0x2f7   :  { %509 = vmatpush.bf16.xpose.msrb.mxu1 %v499_v18 }
 0x2fe   :  { %510 = vmatmul.bf16.vlgmr.msrb.gmra.mxu1 %v498_v19 }
 0x37b   :  { %v511_v21 = vpop.f32.mrf.mxu1 }
 0x37c   :  { %v512_v22 = vadd.f32 %v511_v21, %v501_v20 }
 0x37e   :  { %v515_v23 = vmax.f32 %v512_v22, 0.0 }
 0x380   :  { %v516_v24 = vmin.f32 %v515_v23, 50.0 }
 0x382   :  { %518 = vst.msk [vmem:[#allocation9] sm:$0x1] %vm517_vm0, %v516_v24 }
 0x383   :  { %v513_v25 = vpop.f32.mrf.mxu1  ;;  %529 = dma.vmem_to_hbm [thread:$0]  %s525_s4, 16, %s527_s10, [#allocation5]  }
 0x384   :  { %850 = dma.done.wait [#allocation5], 16  }
 0x385   :  { %851 = vsyncadd [#allocation5], 4294967280 }
 0x386   :  { %534 = vsyncpa [#allocation4], 1 }
 0x387   :  { %535 = vsyncpa [#allocation7], 1 }
 0x388   :  { %536 = vsyncpa [#allocation5], 1 }

</bundles_post_ra>
